<compile_context>
chip_gen: v6e
topology: v6e:2x2x1
jax: 0.10.0
libtpu: 0.0.40
codegen_flags: <defaults>
</compile_context>

<pallas_src>
import jax
import jax.numpy as jnp
from jax.experimental import pallas as pl
from jax.experimental.pallas import tpu as pltpu


# ---------------------------------------------------------------------------
# Pallas kernel: one fused matmul per (batch, spatial-tile) grid step.
# ---------------------------------------------------------------------------
def upsample_kernel(x_ref, w_ref, b_ref, out_ref):
    # x_ref  : [1, Cin, T]        activation tile (channels on sublanes, spatial on lanes)
    # w_ref  : [K*K*Cout, Cin]    phase-major weight matrix (compute dtype)
    # b_ref  : [K*K*Cout, 1]      fp32 bias per output row
    # out_ref: [1, K*K*Cout, T]   lane-dense output tile
    x = x_ref[0].astype(w_ref.dtype)        # in-kernel cast to MXU-native dtype (VPU, cheap)
    acc = jnp.dot(w_ref[...], x, preferred_element_type=jnp.float32)   # single MXU matmul
    out_ref[0] = (acc + b_ref[...]).astype(out_ref.dtype)


# ---------------------------------------------------------------------------
# Generation-aware VMEM configuration & spatial-tile sizing.
# ---------------------------------------------------------------------------
def _vmem_config():
    """(vmem_limit_bytes, spatial_tile_budget_bytes), sized per TPU generation.

    v5e/v6e have 128 MiB VMEM per core; v7x only 64 MiB per TensorCore, so a
    v6e-sized tile must NOT be copied to v7x.  Falls back conservatively to the
    v7x-class numbers if the hardware query is unavailable.
    """
    try:
        cap = int(pltpu.get_tpu_info().vmem_capacity_bytes)
    except Exception:  # noqa: BLE001 — conservative fallback, safe on all gens
        cap = 64 * 1024 * 1024
    if cap > 96 * 1024 * 1024:                       # v5e / v6e class (128 MiB)
        return 96 * 1024 * 1024, 32 * 1024 * 1024
    return 48 * 1024 * 1024, 14 * 1024 * 1024        # v7x class (64 MiB per TC)


def _pick_spatial_tile(hw, per_col_bytes, fixed_bytes, budget, min_tiles):
    """Largest 128-multiple spatial tile whose full working set fits `budget`,
    capped so there are at least `min_tiles` blocks; used with a pl.cdiv grid
    (the ragged last block is masked by Pallas)."""
    if hw <= 128:
        # TODO(synk): deep stages with HW < 128 lanes still hit masked partial
        # stores; a KKC-on-lanes matmul orientation would make them lane-dense.
        return hw
    avail = max(budget - fixed_bytes, 128 * per_col_bytes)
    max_t = max(128, (avail // max(per_col_bytes, 1)) // 128 * 128)
    cap_tiles = max(128, ((-(-hw // min_tiles)) + 127) // 128 * 128)
    hw_floor = (hw // 128) * 128
    return max(128, min(max_t, cap_tiles, hw_floor))


# ---------------------------------------------------------------------------
# Wrapper: ConvTranspose2d forward (PyTorch semantics), NCHW in / NCHW out.
# ---------------------------------------------------------------------------
def upsample_conv_transpose(x_nchw, weight, bias, stride,
                            compute_dtype=jnp.bfloat16, out_dtype=None,
                            phase_major_output=False):
    """ConvTranspose2d forward, specialized to kernel_size == stride (ResUnet Upsample).

    x_nchw: [N, Cin, H, W]; weight: [Cin, Cout, K, K] (PyTorch layout); bias: [Cout].
    Returns [N, Cout, H*stride, W*stride] (or [N, K, K, Cout, H, W] if
    phase_major_output=True, letting a fused consumer skip the pixel shuffle).
    """
    N, Cin, H, W = x_nchw.shape
    wCin, Cout, K, K2 = weight.shape
    assert wCin == Cin and K == K2
    s = int(stride)
    # TODO(synk): general kernel_size != stride would need per-phase tap
    # accumulation; ResUnet's Upsample always uses kernel == stride == 2.
    assert K == s, "specialized to kernel_size == stride (ResUnet Upsample)"

    compute_dtype = jnp.dtype(compute_dtype)
    out_dtype = jnp.dtype(x_nchw.dtype if out_dtype is None else out_dtype)
    HW = H * W
    KKC = K * K * Cout

    # ---- cheap glue (reshape-only on activations, tiny weight transform) ----
    x2 = x_nchw.reshape(N, Cin, HW)                                   # no dtype cast here
    # w2[(kh*K + kw)*Cout + co, ci] = weight[ci, co, kh, kw]
    w2 = jnp.transpose(weight, (2, 3, 1, 0)).reshape(KKC, Cin).astype(compute_dtype)
    b2 = jnp.tile(bias.astype(jnp.float32), (K * K,)).reshape(KKC, 1)

    x_isz = jnp.dtype(x_nchw.dtype).itemsize
    w_isz = compute_dtype.itemsize
    o_isz = out_dtype.itemsize

    vmem_limit, tile_budget = _vmem_config()
    # Per-spatial-column bytes: double-buffered activations + outputs, plus the
    # fp32 accumulator value.  Fixed bytes: double-buffered weight + bias
    # (grid-invariant index_map, so they are only DMA'd once but keep 2 buffers).
    per_col = 2 * Cin * x_isz + 2 * KKC * o_isz + KKC * 4
    fixed = 2 * (KKC * Cin * w_isz + KKC * 4)
    min_tiles = 2 if N == 1 else 1            # keep both v7x TensorCores busy
    t_hw = _pick_spatial_tile(HW, per_col, fixed, tile_budget, min_tiles)
    grid = (N, pl.cdiv(HW, t_hw))

    out_flat = pl.pallas_call(
        upsample_kernel,
        out_shape=jax.ShapeDtypeStruct((N, KKC, HW), out_dtype),
        grid=grid,
        in_specs=[
            pl.BlockSpec((1, Cin, t_hw), lambda n, t: (n, 0, t)),
            pl.BlockSpec((KKC, Cin), lambda n, t: (0, 0)),
            pl.BlockSpec((KKC, 1), lambda n, t: (0, 0)),
        ],
        out_specs=pl.BlockSpec((1, KKC, t_hw), lambda n, t: (n, 0, t)),
        compiler_params=pltpu.CompilerParams(
            dimension_semantics=("parallel", "parallel"),
            vmem_limit_bytes=vmem_limit,
        ),
    )(x2, w2, b2)

    if phase_major_output:
        # Native kernel layout: out[n, kh, kw, co, h, w].  A fused consumer can
        # read this directly via its in_spec index_map and skip the pixel
        # shuffle (saves a full HBM round trip on the layer output).
        return out_flat.reshape(N, K, K, Cout, H, W)

    # ---- phase interleave (pixel shuffle) back to NCHW ----
    # TODO(synk): the kw lane-interleave has no layout-safe in-kernel lowering
    # we could verify (stride-2 lane stores / bf16 bitcast packing are
    # Mosaic-version dependent), so the interleave stays in the wrapper; use
    # phase_major_output=True in a fused pipeline to avoid this XLA transpose.
    out = out_flat.reshape(N, K, K, Cout, H, W)
    out = jnp.transpose(out, (0, 3, 4, 1, 5, 2))                      # [N,Cout,H,K,W,K]
    return out.reshape(N, Cout, H * s, W * s)


# ---------------------------------------------------------------------------
# Pure-JAX reference (direct scatter-add definition of ConvTranspose2d).
# ---------------------------------------------------------------------------
def ref_conv_transpose(x_nchw, weight, bias, stride):
    N, Cin, H, W = x_nchw.shape
    _, Cout, K, _ = weight.shape
    s = stride
    H_out = (H - 1) * s + K
    W_out = (W - 1) * s + K
    out = jnp.zeros((N, Cout, H_out, W_out), jnp.float32)
    for kh in range(K):
        for kw in range(K):
            contrib = jnp.einsum('nchw,cd->ndhw', x_nchw, weight[:, :, kh, kw])
            out = out.at[:, :,
                         kh:kh + (H - 1) * s + 1:s,
                         kw:kw + (W - 1) * s + 1:s].add(contrib)
    return out + bias[None, :, None, None]


if __name__ == "__main__":
    key = jax.random.PRNGKey(0)
    kx, kw, kb = jax.random.split(key, 3)

    # ResUnet uses Upsample(dim, dim, kernel=2, stride=2); small test config.
    Cin, Cout, K, stride = 32, 32, 2, 2
    N, H, W = 2, 16, 16
    x = jax.random.normal(kx, (N, Cin, H, W), jnp.float32)
    # PyTorch ConvTranspose2d weight layout: [in_channels, out_channels, K, K]
    weight = jax.random.normal(kw, (Cin, Cout, K, K), jnp.float32) * 0.1
    bias = jax.random.normal(kb, (Cout,), jnp.float32) * 0.1
    expected = ref_conv_transpose(x, weight, bias, stride)

    # fp32 compute / fp32 output — exact check.
    out = jax.block_until_ready(
        upsample_conv_transpose(x, weight, bias, stride, compute_dtype=jnp.float32))
    assert out.shape == (N, Cout, H * stride, W * stride), out.shape
    assert out.dtype == x.dtype
    assert jnp.allclose(out, expected, rtol=1e-4, atol=1e-4), \
        float(jnp.max(jnp.abs(out - expected)))

    # Default path: bf16 compute (MXU-native), fp32 accumulate, fp32 output.
    out_bf = jax.block_until_ready(upsample_conv_transpose(x, weight, bias, stride))
    assert jnp.allclose(out_bf, expected, rtol=6e-2, atol=6e-2), \
        float(jnp.max(jnp.abs(out_bf - expected)))

    # bf16 output (halves the dominant store-side HBM traffic).
    out_b16 = jax.block_until_ready(
        upsample_conv_transpose(x, weight, bias, stride, out_dtype=jnp.bfloat16))
    assert out_b16.dtype == jnp.bfloat16
    assert jnp.allclose(out_b16.astype(jnp.float32), expected, rtol=6e-2, atol=6e-2), \
        float(jnp.max(jnp.abs(out_b16.astype(jnp.float32) - expected)))

    # Phase-major layout (fused consumer skips the wrapper pixel shuffle).
    pm = jax.block_until_ready(
        upsample_conv_transpose(x, weight, bias, stride,
                                compute_dtype=jnp.float32, phase_major_output=True))
    assert pm.shape == (N, K, K, Cout, H, W), pm.shape
    pm_i = jnp.transpose(pm, (0, 3, 4, 1, 5, 2)).reshape(N, Cout, H * 2, W * 2)
    assert jnp.allclose(pm_i, expected, rtol=1e-4, atol=1e-4), \
        float(jnp.max(jnp.abs(pm_i - expected)))

    # Ragged spatial size (HW % 128 != 0) + N == 1 (forces >= 2 spatial tiles
    # so a v7x 2-TC "parallel" grid has work for both cores) — fp32 exact.
    N2, H2, W2 = 1, 12, 12
    x_b = jax.random.normal(kx, (N2, Cin, H2, W2), jnp.float32)
    expected_b = ref_conv_transpose(x_b, weight, bias, stride)
    out_b = jax.block_until_ready(
        upsample_conv_transpose(x_b, weight, bias, stride, compute_dtype=jnp.float32))
    assert out_b.shape == (N2, Cout, H2 * stride, W2 * stride), out_b.shape
    assert jnp.allclose(out_b, expected_b, rtol=1e-4, atol=1e-4), \
        float(jnp.max(jnp.abs(out_b - expected_b)))

    print("KERNEL_OK")
</pallas_src>

<mosaic_0001>
module attributes {stable_mosaic.version = 11 : i64} {
  func.func @upsample_kernel(%arg0: i32, %arg1: i32, %arg2: memref<1x32x256xf32, #tpu.memory_space<vmem>>, %arg3: memref<128x32xf32, #tpu.memory_space<vmem>>, %arg4: memref<128x1xf32, #tpu.memory_space<vmem>>, %arg5: memref<1x128x256xf32, #tpu.memory_space<vmem>>) attributes {dimension_semantics = [#tpu.dimension_semantics<parallel>, #tpu.dimension_semantics<parallel>], iteration_bounds = array<i64: 2, 1>, scalar_prefetch = 0 : i64, scratch_operands = 0 : i64, tpu.core_type = #tpu.core_type<tc>, window_params = [{transform_indices = @transform_0, window_bounds = array<i64: 1, 32, 256>}, {pipeline_mode = #tpu.pipeline_mode<synchronous>, transform_indices = @transform_1, window_bounds = array<i64: 128, 32>}, {pipeline_mode = #tpu.pipeline_mode<synchronous>, transform_indices = @transform_2, window_bounds = array<i64: 128, 1>}, {transform_indices = @transform_3, window_bounds = array<i64: 1, 128, 256>}]} {
    %c0 = arith.constant 0 : index
    %c0_0 = arith.constant 0 : index
    %c0_1 = arith.constant 0 : index
    %0 = vector.load %arg2[%c0, %c0_0, %c0_1] : memref<1x32x256xf32, #tpu.memory_space<vmem>>, vector<1x32x256xf32>
    %1 = vector.shape_cast %0 : vector<1x32x256xf32> to vector<32x256xf32>
    %c0_2 = arith.constant 0 : index
    %c0_3 = arith.constant 0 : index
    %2 = vector.load %arg3[%c0_2, %c0_3] : memref<128x32xf32, #tpu.memory_space<vmem>>, vector<128x32xf32>
    %cst = arith.constant dense<0.000000e+00> : vector<128x256xf32>
    %3 = tpu.matmul %2, %1, %cst {dimension_numbers = #tpu.dot_dimension_numbers<[1], [0], [0], [1], [0, 0, 1, 1], [], []>} : vector<128x32xf32>, vector<32x256xf32>, vector<128x256xf32> -> vector<128x256xf32>
    %c0_4 = arith.constant 0 : index
    %c0_5 = arith.constant 0 : index
    %4 = vector.load %arg4[%c0_4, %c0_5] : memref<128x1xf32, #tpu.memory_space<vmem>>, vector<128x1xf32>
    %5 = vector.broadcast %4 : vector<128x1xf32> to vector<128x256xf32>
    %6 = arith.addf %3, %5 : vector<128x256xf32>
    %c0_6 = arith.constant 0 : index
    %c0_7 = arith.constant 0 : index
    %c0_8 = arith.constant 0 : index
    %7 = vector.load %arg5[%c0_6, %c0_7, %c0_8] : memref<1x128x256xf32, #tpu.memory_space<vmem>>, vector<1x128x256xf32>
    %8 = vector.shape_cast %7 : vector<1x128x256xf32> to vector<128x256xf32>
    %9 = vector.shape_cast %6 : vector<128x256xf32> to vector<1x128x256xf32>
    tpu.vector_store %arg5[%c0_6, %c0_7, %c0_8], %9 {strides = array<i32>} : memref<1x128x256xf32, #tpu.memory_space<vmem>>, vector<1x128x256xf32>,
    return
  }
  func.func @transform_0(%arg0: i32, %arg1: i32) -> (i32, i32, i32) {
    %c0_i32 = arith.constant 0 : i32
    %c0_i32_0 = arith.constant 0 : i32
    return %arg0, %c0_i32, %arg1 : i32, i32, i32
  }
  func.func @transform_1(%arg0: i32, %arg1: i32) -> (i32, i32) {
    %c0_i32 = arith.constant 0 : i32
    %c0_i32_0 = arith.constant 0 : i32
    %c0_i32_1 = arith.constant 0 : i32
    return %c0_i32, %c0_i32_0 : i32, i32
  }
  func.func @transform_2(%arg0: i32, %arg1: i32) -> (i32, i32) {
    %c0_i32 = arith.constant 0 : i32
    %c0_i32_0 = arith.constant 0 : i32
    %c0_i32_1 = arith.constant 0 : i32
    return %c0_i32, %c0_i32_0 : i32, i32
  }
  func.func @transform_3(%arg0: i32, %arg1: i32) -> (i32, i32, i32) {
    %c0_i32 = arith.constant 0 : i32
    %c0_i32_0 = arith.constant 0 : i32
    return %arg0, %c0_i32, %arg1 : i32, i32, i32
  }
}

</mosaic_0001>

<bundles_post_ra>
// kernel: tpu_custom_call.1
= control target key start
LH: loop header
LB: loop body
LE: loop exit
PB: predicated region body
PF: predicated region fallthrough
CT: control target
= control target key end

     0   :  { %8 = vsyncpa [#allocation3], 0  ;;  %s1157_s0 = inlined_call_operand.vmem [shape: f32[2,32,256], index: 0, kind: input, shape index: {}]   ;;  %s1158_s1 = inlined_call_operand.vmem [shape: f32[128,32], index: 1, kind: input, shape index: {}]   ;;  %s1159_s2 = inlined_call_operand.vmem [shape: f32[128,1], index: 2, kind: input, shape index: {}]   ;;  %s1160_s3 = inlined_call_operand.hbm [shape: f32[2,128,256], index: 3, kind: output, shape index: {}]  }
   0x1   :  { %10 = vsyncpa [#allocation3 + $0x1], 0  ;;  %s860_s12 = smov 0   ;;  %s862_s13 = smov 0  }
   0x2   :  { %s864_s14 = smov 0   ;;  %s866_s15 = smov 0  }
   0x3   :  { %s868_s16 = smov 0   ;;  %s870_s17 = smov 0  }
   0x4 LB: > { %s657_s18 = sadd.s32 4294967295, %s833_s17   ;;  %s658_s19 = sadd.s32 4294967294, %s833_s17   ;;  %s833_s17 = sphi %s870_s17, %s16_s17   ;;  %s829_s16 = sphi %s868_s16, %s1167_s16   ;;  %s825_s15 = sphi %s866_s15, %s1166_s15   ;;  %s821_s14 = sphi %s864_s14, %s1165_s14   ;;  %s817_s13 = sphi %s862_s13, %s1164_s13   ;;  %s813_s12 = sphi %s860_s12, %s1163_s12  }
   0x5   : > { %s28_s20 = sadd.s32 1, %s829_s16  ;;  %s107_s21 = sadd.s32 1, %s821_s14 }
   0x6   : > { %p30_p0 = scmp.ge.s32.totalorder %s28_s20, 2  ;;  %p117_p1 = scmp.ne.s32.totalorder %s821_s14, %s817_s13 }
   0x7   : > { %p118_p2 = scmp.eq.s32.totalorder %s657_s18, 1  ;;  %p123_p3 = scmp.ne.s32.totalorder %s817_s13, %s813_s12 }
   0x8   : > { %s1169_s20 = smov (%p30_p0, %s28_s20), 0  ;;  %p124_p5 = scmp.eq.s32.totalorder %s658_s19, 1 }
   0x9   : > { %p900_p4 = por %p118_p2, %p117_p1  ;;  %s102_s23 = ssub.s32 %s829_s16, %s1169_s20 }
   0xa   : > { %p661_p6 = scmp.ge.s32.totalorder %s833_s17, 1  ;;  %p105_p7 = scmp.eq.s32.totalorder %s102_s23, 0 }
   0xb   : > { %p907_p8 = por %p124_p5, %p123_p3  ;;  %p161_p9 = scmp.lt.s32.totalorder %s833_s17, 3 }
   0xc   : > { %s913_s25 = scalar_select %p105_p7, %s821_s14, %s107_s21  }
   0xd   : > { %p162_p10 = pnand %p661_p6, %p161_p9 }
   0xe   : > { %p190_p11 = scmp.lt.s32.totalorder (!%p162_p10), %s825_s15, 1  ;;  %s837_s9 = smov (!%p162_p10), [#allocation2]  }
   0xf   : > { %165 = sbr.rel (%p162_p10) target bundleno = 272 (0x110), region = 32  ;;  %s761_s10 = sshll.u32 (!%p162_p10), %s837_s9, 4  ;;  %s762_s10 = int_to_ptr.vmem [resolvable:$false] %s761_s10 }
  0x10   : > { %s763_s11 = scalar_lea.vmem (!%p162_p10), %s762_s10, 8192 }
  0x14   : > { %v835_v0 = vmov 0.0   ;;  %s191_s26 = scalar_select %p190_p11, %s825_s15, 1  ;;  %v836_v1 = vmov 0   ;;  %v226_v2 = vld [vmem:[%s1159_s2 + $0x10] sm:$0xff]  ;;  %v224_v3 = vld [vmem:[%s1159_s2] sm:$0xff]  ;;  %vm320_vm0 = vcmask 261120  }
  0x15   : > { %433 = vmatprep.mubr.f32.mxu0 %v835_v0  ;;  %481 = vmatprep.mubr.f32.mxu1 %v835_v0  ;;  %v208_v12 = vld [vmem:[%s1158_s1] sm:$0xff]  ;;  %v227_v14 = vld [vmem:[%s1159_s2 + $0x18] sm:$0xff]  ;;  %v225_v15 = vld [vmem:[%s1159_s2 + $0x8] sm:$0xff] }
  0x16   : > { %756 = vset.pattern.permute.xlu1 %v836_v1  ;;  %755 = vset.pattern.permute.xlu0 %v836_v1  ;;  %s686_s27 = sshll.u32 %s191_s26, 6  ;;  %v216_v13 = vld [vmem:[%s1158_s1 + $0x40] sm:$0xff]  ;;  %v209_v16 = vld [vmem:[%s1158_s1 + $0x8] sm:$0xff]  ;;  %v210_v20 = vld [vmem:[%s1158_s1 + $0x10] sm:$0xff] }
  0x17   : > { %s197_s30 = scalar_lea.vmem %s1157_s0, %s686_s27  ;;  %252 = vperm.xlu1 %756, %v226_v2   ;;  %242 = vperm.xlu0 %755, %v224_v3   ;;  %v217_v17 = vld [vmem:[%s1158_s1 + $0x48] sm:$0xff]  ;;  %v228_v19 = vld [vmem:[%s1159_s2 + $0x20] sm:$0xff]  ;;  %v218_v21 = vld [vmem:[%s1158_s1 + $0x50] sm:$0xff]  ;;  %s186_s27 = sand.u32 1, %s817_s13  }
  0x18   : > { %v207_v4 = vld [vmem:[%s197_s30 + $0x38] sm:$0xff]  ;;  %v206_v5 = vld [vmem:[%s197_s30 + $0x30] sm:$0xff]  ;;  %v205_v6 = vld [vmem:[%s197_s30 + $0x28] sm:$0xff]  ;;  %s662_s28 = sshll.u32 %s186_s27, 8 }
  0x19   : > { %393 = vmatprep.subr.mxu0 %v207_v4  ;;  %688 = vmatprep.subr.mxu1 %v207_v4  ;;  %v204_v7 = vld [vmem:[%s197_s30 + $0x20] sm:$0xff]  ;;  %v203_v8 = vld [vmem:[%s197_s30 + $0x18] sm:$0xff]  ;;  %v202_v9 = vld [vmem:[%s197_s30 + $0x10] sm:$0xff]  ;;  %s1059_s29 = scalar_lea.vmem [#allocation2], %s662_s28 }
  0x1a   : > { %394 = vmatpush1.msra.mxu0 %v206_v5  ;;  %692 = vmatpush1.msra.mxu1 %v206_v5  ;;  %v201_v10 = vld [vmem:[%s197_s30 + $0x8] sm:$0xff]  ;;  %v200_v11 = vld [vmem:[%s197_s30] sm:$0xff]  ;;  %v231_v22 = vld [vmem:[%s1159_s2 + $0x38] sm:$0xff]  ;;  %s687_s30 = sshll.u32 %s825_s15, 12  ;;  %s578_s4 = sshll.u32 %s1059_s29, 4  ;;  %s1103_s4 = int_to_ptr.vmem [resolvable:$true] %s578_s4 }
  0x1b   : > { %395 = vmatprep.subr.mxu0 %v205_v6  ;;  %689 = vmatprep.subr.mxu1 %v205_v6  ;;  %v229_v18 = vld [vmem:[%s1159_s2 + $0x28] sm:$0xff]  ;;  %v230_v23 = vld [vmem:[%s1159_s2 + $0x30] sm:$0xff]  ;;  %v211_v24 = vld [vmem:[%s1158_s1 + $0x18] sm:$0xff]  ;;  %s1101_s7 = scalar_lea.hbm %s1160_s3, %s687_s30  ;;  %s1112_s15 = scalar_lea.sflag [#allocation3], %s186_s27 }
  0x1c   : > { %396 = vmatpush1.msra.mxu0 %v204_v7  ;;  %693 = vmatpush1.msra.mxu1 %v204_v7  ;;  %v219_v25 = vld [vmem:[%s1158_s1 + $0x58] sm:$0xff]  ;;  %v233_v26 = vld [vmem:[%s1159_s2 + $0x48] sm:$0xff]  ;;  %v232_v27 = vld [vmem:[%s1159_s2 + $0x40] sm:$0xff]  ;;  %s757_s8 = scalar_lea.vmem %s1103_s4, 4096  ;;  %p764_p1 = scmp.lt.s32.totalorder %s1103_s4, %s762_s10 }
  0x1d   : > { %397 = vmatprep.subr.mxu0 %v203_v8  ;;  %690 = vmatprep.subr.mxu1 %v203_v8  ;;  %v212_v28 = vld [vmem:[%s1158_s1 + $0x20] sm:$0xff]  ;;  %v235_v30 = vld [vmem:[%s1159_s2 + $0x58] sm:$0xff]  ;;  %v234_v31 = vld [vmem:[%s1159_s2 + $0x50] sm:$0xff]  ;;  %p758_p12 = scmp.ne.s32.totalorder %s1103_s4, %s757_s8  ;;  %p765_p2 = scmp.lt.s32.totalorder %s763_s11, %s757_s8 }
  0x1e   : > { %398 = vmatpush1.msra.mxu0 %v202_v9  ;;  %694 = vmatpush1.msra.mxu1 %v202_v9  ;;  %v220_v29 = vld [vmem:[%s1158_s1 + $0x60] sm:$0xff]  ;;  %v213_v32 = vld [vmem:[%s1158_s1 + $0x28] sm:$0xff]  ;;  %v214_v36 = vld [vmem:[%s1158_s1 + $0x30] sm:$0xff] }
  0x1f   : > { %399 = vmatprep.subr.mxu0 %v201_v10  ;;  %691 = vmatprep.subr.mxu1 %v201_v10  ;;  %v221_v33 = vld [vmem:[%s1158_s1 + $0x68] sm:$0xff]  ;;  %v236_v35 = vld [vmem:[%s1159_s2 + $0x60] sm:$0xff]  ;;  %v222_v37 = vld [vmem:[%s1158_s1 + $0x70] sm:$0xff]  ;;  %p759_p13 = pnand %p758_p12, %p900_p4  ;;  %p766_p3 = por %p765_p2, %p764_p1 }
  0x20   : > { %400 = vmatpush1.msra.mxu0 %v200_v11  ;;  %695 = vmatpush1.msra.mxu1 %v200_v11  ;;  %v237_v34 = vld [vmem:[%s1159_s2 + $0x68] sm:$0xff]  ;;  %v239_v38 = vld [vmem:[%s1159_s2 + $0x78] sm:$0xff]  ;;  %v238_v39 = vld [vmem:[%s1159_s2 + $0x70] sm:$0xff] }
  0x21   : > { %665 = vmatmul.mubr.msk.f32.vlgmr.msra.gmra.mxu0 %vm320_vm0, %v208_v12  ;;  %673 = vmatmul.mubr.msk.f32.vlgmr.msra.gmra.mxu1 %vm320_vm0, %v216_v13  ;;  %v215_v40 = vld [vmem:[%s1158_s1 + $0x38] sm:$0xff]  ;;  %p760_p0 = pneg %p759_p13 }
  0x22   : > { %439 = vmatprep.mubr.f32.mxu0 %v835_v0  ;;  %487 = vmatprep.mubr.f32.mxu1 %v835_v0  ;;  %v223_v41 = vld [vmem:[%s1158_s1 + $0x78] sm:$0xff] }
  0x23   : > { %257 = vperm.xlu1 %756, %v227_v14   ;;  %247 = vperm.xlu0 %755, %v225_v15   ;;  %p767_p5 = pnand %p766_p3, %p760_p0 }
  0x25   : > { %666 = vmatmul.mubr.msk.f32.gmra.mxu0 %vm320_vm0, %v209_v16  ;;  %674 = vmatmul.mubr.msk.f32.gmra.mxu1 %vm320_vm0, %v217_v17 }
  0x26   : > { %445 = vmatprep.mubr.f32.mxu0 %v835_v0  ;;  %493 = vmatprep.mubr.f32.mxu1 %v835_v0 }
  0x27   : > { %267 = vperm.xlu1 %756, %v229_v18   ;;  %262 = vperm.xlu0 %755, %v228_v19  }
  0x29   : > { %667 = vmatmul.mubr.msk.f32.gmra.mxu0 %vm320_vm0, %v210_v20  ;;  %675 = vmatmul.mubr.msk.f32.gmra.mxu1 %vm320_vm0, %v218_v21 }
  0x2a   : > { %451 = vmatprep.mubr.f32.mxu0 %v835_v0  ;;  %499 = vmatprep.mubr.f32.mxu1 %v835_v0 }
  0x2b   : > { %277 = vperm.xlu1 %756, %v231_v22   ;;  %272 = vperm.xlu0 %755, %v230_v23  }
  0x2d   : > { %668 = vmatmul.mubr.msk.f32.gmra.mxu0 %vm320_vm0, %v211_v24  ;;  %676 = vmatmul.mubr.msk.f32.gmra.mxu1 %vm320_vm0, %v219_v25 }
  0x2e   : > { %457 = vmatprep.mubr.f32.mxu0 %v835_v0  ;;  %505 = vmatprep.mubr.f32.mxu1 %v835_v0 }
  0x2f   : > { %287 = vperm.xlu1 %756, %v233_v26   ;;  %282 = vperm.xlu0 %755, %v232_v27  }
  0x31   : > { %669 = vmatmul.mubr.msk.f32.gmra.mxu0 %vm320_vm0, %v212_v28  ;;  %677 = vmatmul.mubr.msk.f32.gmra.mxu1 %vm320_vm0, %v220_v29 }
  0x32   : > { %463 = vmatprep.mubr.f32.mxu0 %v835_v0  ;;  %511 = vmatprep.mubr.f32.mxu1 %v835_v0 }
  0x33   : > { %297 = vperm.xlu1 %756, %v235_v30   ;;  %292 = vperm.xlu0 %755, %v234_v31  }
  0x35   : > { %670 = vmatmul.mubr.msk.f32.gmra.mxu0 %vm320_vm0, %v213_v32  ;;  %678 = vmatmul.mubr.msk.f32.gmra.mxu1 %vm320_vm0, %v221_v33 }
  0x36   : > { %469 = vmatprep.mubr.f32.mxu0 %v835_v0  ;;  %517 = vmatprep.mubr.f32.mxu1 %v835_v0 }
  0x37   : > { %307 = vperm.xlu1 %756, %v237_v34   ;;  %302 = vperm.xlu0 %755, %v236_v35  }
  0x39   : > { %671 = vmatmul.mubr.msk.f32.gmra.mxu0 %vm320_vm0, %v214_v36  ;;  %679 = vmatmul.mubr.msk.f32.gmra.mxu1 %vm320_vm0, %v222_v37 }
  0x3a   : > { %475 = vmatprep.mubr.f32.mxu0 %v835_v0  ;;  %523 = vmatprep.mubr.f32.mxu1 %v835_v0 }
  0x3b   : > { %317 = vperm.xlu1 %756, %v239_v38   ;;  %312 = vperm.xlu0 %755, %v238_v39  }
  0x3d   : > { %672 = vmatmul.mubr.msk.f32.gmra.mxu0 %vm320_vm0, %v215_v40  ;;  %680 = vmatmul.mubr.msk.f32.gmra.mxu1 %vm320_vm0, %v223_v41 }
  0x92   : > { %v243_v42 = vpop.permute.xlu0 %242  ;;  %v253_v43 = vpop.permute.xlu1 %252 }
  0x9e   : > { %v248_v44 = vpop.permute.xlu0 %247  ;;  %v258_v45 = vpop.permute.xlu1 %257 }
  0xa2   : > { %v1048_v46 = vpop.permute.xlu0 %262  ;;  %v1050_v47 = vpop.permute.xlu1 %267 }
  0xa6   : > { %v1052_v48 = vpop.permute.xlu0 %272  ;;  %v1055_v49 = vpop.permute.xlu1 %277 }
  0xaa   : > { %v283_v50 = vpop.permute.xlu0 %282  ;;  %v288_v57 = vpop.permute.xlu1 %287 }
  0xae   : > { %v293_v2 = vpop.permute.xlu0 %292  ;;  %v298_v11 = vpop.permute.xlu1 %297 }
  0xb2   : > { %v303_v20 = vpop.permute.xlu0 %302  ;;  %v308_v29 = vpop.permute.xlu1 %307 }
  0xb6   : > { %v313_v38 = vpop.permute.xlu0 %312 }
  0xe1   : > { %v435_v51 = vpop.f32.mrf.mxu0  ;;  %v483_v52 = vpop.f32.mrf.mxu1 }
  0xe2   : > { %v436_v53 = vadd.f32 %v435_v51, %v243_v42  ;;  %v484_v54 = vadd.f32 %v483_v52, %v283_v50 }
  0xe3   : > { %v437_v55 = vpop.f32.mrf.mxu0  ;;  %v485_v56 = vpop.f32.mrf.mxu1 }
  0xe4   : > { %530 = vst [vmem:[%s1059_s29] sm:$0xff] %v436_v53  ;;  %546 = vst [vmem:[%s1059_s29 + $0x80] sm:$0xff] %v484_v54  ;;  %v438_v58 = vadd.f32 %v437_v55, %v243_v42  ;;  %v486_v59 = vadd.f32 %v485_v56, %v283_v50  ;;  %v318_v50 = vpop.permute.xlu1 %317 }
  0xe5   : > { %v441_v60 = vpop.f32.mrf.mxu0  ;;  %v489_v61 = vpop.f32.mrf.mxu1 }
  0xe6   : > { %531 = vst [vmem:[%s1059_s29 + $0x8] sm:$0xff] %v438_v58  ;;  %547 = vst [vmem:[%s1059_s29 + $0x88] sm:$0xff] %v486_v59  ;;  %v442_v62 = vadd.f32 %v441_v60, %v248_v44  ;;  %v490_v63 = vadd.f32 %v489_v61, %v288_v57 }
  0xe7   : > { %v443_v0 = vpop.f32.mrf.mxu0  ;;  %v491_v1 = vpop.f32.mrf.mxu1 }
  0xe8   : > { %532 = vst [vmem:[%s1059_s29 + $0x10] sm:$0xff] %v442_v62  ;;  %548 = vst [vmem:[%s1059_s29 + $0x90] sm:$0xff] %v490_v63  ;;  %v444_v3 = vadd.f32 %v443_v0, %v248_v44  ;;  %v492_v4 = vadd.f32 %v491_v1, %v288_v57 }
  0xe9   : > { %v447_v5 = vpop.f32.mrf.mxu0  ;;  %v495_v6 = vpop.f32.mrf.mxu1 }
  0xea   : > { %533 = vst [vmem:[%s1059_s29 + $0x18] sm:$0xff] %v444_v3  ;;  %549 = vst [vmem:[%s1059_s29 + $0x98] sm:$0xff] %v492_v4  ;;  %v448_v7 = vadd.f32 %v447_v5, %v253_v43  ;;  %v496_v8 = vadd.f32 %v495_v6, %v293_v2 }
  0xeb   : > { %v449_v9 = vpop.f32.mrf.mxu0  ;;  %v497_v10 = vpop.f32.mrf.mxu1 }
  0xec   : > { %534 = vst [vmem:[%s1059_s29 + $0x20] sm:$0xff] %v448_v7  ;;  %550 = vst [vmem:[%s1059_s29 + $0xa0] sm:$0xff] %v496_v8  ;;  %v450_v12 = vadd.f32 %v449_v9, %v253_v43  ;;  %v498_v13 = vadd.f32 %v497_v10, %v293_v2 }
  0xed   : > { %v453_v14 = vpop.f32.mrf.mxu0  ;;  %v501_v15 = vpop.f32.mrf.mxu1 }
  0xee   : > { %535 = vst [vmem:[%s1059_s29 + $0x28] sm:$0xff] %v450_v12  ;;  %551 = vst [vmem:[%s1059_s29 + $0xa8] sm:$0xff] %v498_v13  ;;  %v454_v16 = vadd.f32 %v453_v14, %v258_v45  ;;  %v502_v17 = vadd.f32 %v501_v15, %v298_v11 }
  0xef   : > { %v455_v18 = vpop.f32.mrf.mxu0  ;;  %v503_v19 = vpop.f32.mrf.mxu1 }
  0xf0   : > { %536 = vst [vmem:[%s1059_s29 + $0x30] sm:$0xff] %v454_v16  ;;  %552 = vst [vmem:[%s1059_s29 + $0xb0] sm:$0xff] %v502_v17  ;;  %v456_v21 = vadd.f32 %v455_v18, %v258_v45  ;;  %v504_v22 = vadd.f32 %v503_v19, %v298_v11 }
  0xf1   : > { %v459_v23 = vpop.f32.mrf.mxu0  ;;  %v507_v24 = vpop.f32.mrf.mxu1 }
  0xf2   : > { %537 = vst [vmem:[%s1059_s29 + $0x38] sm:$0xff] %v456_v21  ;;  %553 = vst [vmem:[%s1059_s29 + $0xb8] sm:$0xff] %v504_v22  ;;  %v460_v25 = vadd.f32 %v459_v23, %v1048_v46  ;;  %v508_v26 = vadd.f32 %v507_v24, %v303_v20 }
  0xf3   : > { %v461_v27 = vpop.f32.mrf.mxu0  ;;  %v509_v28 = vpop.f32.mrf.mxu1 }
  0xf4   : > { %538 = vst [vmem:[%s1059_s29 + $0x40] sm:$0xff] %v460_v25  ;;  %554 = vst [vmem:[%s1059_s29 + $0xc0] sm:$0xff] %v508_v26  ;;  %v462_v30 = vadd.f32 %v461_v27, %v1048_v46  ;;  %v510_v31 = vadd.f32 %v509_v28, %v303_v20 }
  0xf5   : > { %v465_v32 = vpop.f32.mrf.mxu0  ;;  %v513_v33 = vpop.f32.mrf.mxu1 }
  0xf6   : > { %539 = vst [vmem:[%s1059_s29 + $0x48] sm:$0xff] %v462_v30  ;;  %555 = vst [vmem:[%s1059_s29 + $0xc8] sm:$0xff] %v510_v31  ;;  %v466_v34 = vadd.f32 %v465_v32, %v1050_v47  ;;  %v514_v35 = vadd.f32 %v513_v33, %v308_v29 }
  0xf7   : > { %v467_v36 = vpop.f32.mrf.mxu0  ;;  %v515_v37 = vpop.f32.mrf.mxu1 }
  0xf8   : > { %540 = vst [vmem:[%s1059_s29 + $0x50] sm:$0xff] %v466_v34  ;;  %556 = vst [vmem:[%s1059_s29 + $0xd0] sm:$0xff] %v514_v35  ;;  %v468_v39 = vadd.f32 %v467_v36, %v1050_v47  ;;  %v516_v40 = vadd.f32 %v515_v37, %v308_v29 }
  0xf9   : > { %v471_v41 = vpop.f32.mrf.mxu0  ;;  %v519_v42 = vpop.f32.mrf.mxu1 }
  0xfa   : > { %541 = vst [vmem:[%s1059_s29 + $0x58] sm:$0xff] %v468_v39  ;;  %557 = vst [vmem:[%s1059_s29 + $0xd8] sm:$0xff] %v516_v40  ;;  %v472_v43 = vadd.f32 %v471_v41, %v1052_v48  ;;  %v520_v44 = vadd.f32 %v519_v42, %v313_v38 }
  0xfb   : > { %v473_v45 = vpop.f32.mrf.mxu0  ;;  %v521_v46 = vpop.f32.mrf.mxu1 }
  0xfc   : > { %542 = vst [vmem:[%s1059_s29 + $0x60] sm:$0xff] %v472_v43  ;;  %558 = vst [vmem:[%s1059_s29 + $0xe0] sm:$0xff] %v520_v44  ;;  %v474_v47 = vadd.f32 %v473_v45, %v1052_v48  ;;  %v522_v51 = vadd.f32 %v521_v46, %v313_v38 }
  0xfd   : > { %v477_v52 = vpop.f32.mrf.mxu0  ;;  %v525_v53 = vpop.f32.mrf.mxu1 }
  0xfe   : > { %543 = vst [vmem:[%s1059_s29 + $0x68] sm:$0xff] %v474_v47  ;;  %559 = vst [vmem:[%s1059_s29 + $0xe8] sm:$0xff] %v522_v51  ;;  %v478_v54 = vadd.f32 %v477_v52, %v1055_v49  ;;  %v526_v55 = vadd.f32 %v525_v53, %v318_v50 }
  0xff   : > { %v479_v56 = vpop.f32.mrf.mxu0  ;;  %v527_v57 = vpop.f32.mrf.mxu1 }
 0x100   : > { %544 = vst [vmem:[%s1059_s29 + $0x70] sm:$0xff] %v478_v54  ;;  %560 = vst [vmem:[%s1059_s29 + $0xf0] sm:$0xff] %v526_v55  ;;  %v480_v48 = vadd.f32 %v479_v56, %v1055_v49  ;;  %v528_v58 = vadd.f32 %v527_v57, %v318_v50 }
 0x102   : > { %545 = vst [vmem:[%s1059_s29 + $0x78] sm:$0xff] %v480_v48  ;;  %561 = vst [vmem:[%s1059_s29 + $0xf8] sm:$0xff] %v528_v58 }
 0x103   : > { %770 = shalt.err (!%p767_p5)
}
 0x104   : > { %s771_s18 = scalar_lea.hbm %s1101_s7, 4096  ;;  %s775_s23 = scalar_lea.hbm %s1160_s3, 8192 }
 0x105   : > { %p772_p6 = scmp.ne.s32.totalorder %s1101_s7, %s771_s18  ;;  %p776_p10 = scmp.lt.s32.totalorder %s1101_s7, %s1160_s3 }
 0x106   : > { %p777_p11 = scmp.lt.s32.totalorder %s775_s23, %s771_s18 }
 0x107   : > { %p773_p7 = pnand %p772_p6, %p900_p4 }
 0x108   : > { %p778_p12 = por %p777_p11, %p776_p10 }
 0x109   : > { %p774_p9 = pneg %p773_p7 }
 0x10b   : > { %p779_p13 = pnand %p778_p12, %p774_p9 }
 0x10d   : > { %782 = shalt.err (!%p779_p13)
}
 0x10e   : > { %s838_s28 = smov 256   ;;  %s839_s29 = smov 16  }
 0x10f   : > { %696 = dma.vmem_to_hbm [thread:$0]  (%p900_p4), %s1103_s4, 4096, %s1101_s7, %s1112_s15, %s838_s28, %s838_s28, %s839_s29  }
 0x110 PF: > { %p702_p0 = scmp.ge.s32.totalorder %s833_s17, 2  ;;  %s593_s30 = sand.u32 1, %s813_s12  }
 0x111   : > { %s594_s5 = scalar_lea.sflag [#allocation3], %s593_s30 }
 0x112   : > { %p699_p1 = pnand %p702_p0, %p907_p8 }
 0x114   : > { %p700_p2 = pneg %p699_p1 }
 0x116   : > { %808 = dma.done.wait (%p700_p2), %s594_s5, 4096  }
 0x117   : > { %810 = vsyncadd (%p700_p2), %s594_s5, 4294963200  ;;  %s16_s17 = sadd.s32 1, %s833_s17   ;;  %s1163_s12 = smov %s817_s13 }
 0x118   : > { %p13_p3 = scmp.ge.s32.totalorder %s16_s17, 4   ;;  %s1164_s13 = smov %s821_s14 }
 0x119   : > { %s1165_s14 = smov %s913_s25  ;;  %s1166_s15 = smov %s829_s16 }
 0x11a   : > { %s1167_s16 = smov %s1169_s20  ;;  %15 = sbr.rel (!%p13_p3) target bundleno = 4 (0x4), region = 67 }
 0x11f   :  { %599 = vsyncpa [#allocation3], 1 }
 0x120   :  { %601 = vsyncpa [#allocation3 + $0x1], 1 }

</bundles_post_ra>
